<compile_context>
chip_gen: v7x
topology: tpu7x:2x2x1
jax: 0.10.0
libtpu: 0.0.40
codegen_flags: <defaults>
</compile_context>

<pallas_src>
import jax
import jax.numpy as jnp
import numpy as np
from jax.experimental import pallas as pl
from jax.experimental.pallas import tpu as pltpu


def _normalize_kernel(x_ref, mx_ref, isx_ref, o_ref):
    # (x - mx) * iSx ; mx / iSx are a single (1, D) row broadcast over the row tile.
    o_ref[...] = (x_ref[...] - mx_ref[...]) * isx_ref[...]


def regressor_normalize(x, mx, iSx):
    """Pallas implementation of the `(x - mx) * iSx` whitening in Regressor.forward."""
    orig_shape = x.shape
    d = orig_shape[-1]
    rows = int(np.prod(orig_shape[:-1]))

    x2d = x.reshape(rows, d)
    mx2d = jnp.asarray(mx, dtype=x.dtype).reshape(1, d)
    isx2d = jnp.asarray(iSx, dtype=x.dtype).reshape(1, d)

    itemsize = jnp.dtype(x.dtype).itemsize
    # dtype-aware native sublane tile: f32 -> 8 rows, bf16 -> 16, int8/fp8 -> 32
    min_rows = 8 * max(1, 4 // itemsize)

    # Large row tile, budgeted at ~2 MiB of x per block so (in + out) double
    # buffers stay far under the v7x scoped-VMEM default (32 MiB of 64 MiB).
    target_block_bytes = 2 * 1024 * 1024
    row_tile = min(2048, max(min_rows, target_block_bytes // max(1, d * itemsize)))
    row_tile = max(min_rows, (row_tile // min_rows) * min_rows)

    if rows <= row_tile:
        # Small input: one whole-array block -> no grid loop, no padding.
        block_rows = rows
        padded_rows = rows
    else:
        block_rows = row_tile
        padded_rows = pl.cdiv(rows, block_rows) * block_rows
        if padded_rows != rows:
            x2d = jnp.pad(x2d, ((0, padded_rows - rows), (0, 0)))

    grid = (padded_rows // block_rows,)

    out2d = pl.pallas_call(
        _normalize_kernel,
        out_shape=jax.ShapeDtypeStruct((padded_rows, d), x.dtype),
        grid=grid,
        in_specs=[
            pl.BlockSpec((block_rows, d), lambda i: (i, 0)),
            pl.BlockSpec((1, d), lambda i: (0, 0)),
            pl.BlockSpec((1, d), lambda i: (0, 0)),
        ],
        out_specs=pl.BlockSpec((block_rows, d), lambda i: (i, 0)),
        compiler_params=pltpu.CompilerParams(
            # Row blocks are fully independent -> shard across v7x's two TensorCores.
            dimension_semantics=("parallel",),
        ),
    )(x2d, mx2d, isx2d)

    if padded_rows != rows:
        out2d = out2d[:rows]
    return out2d.reshape(orig_shape)


def regressor_forward(x, mx, iSx, *, normalize=True, model_fn=None,
                      output_density=None, my=None, Sy=None):
    """Forward pass of Regressor; the normalization runs in the Pallas kernel."""
    # TODO(synk): to_complex(x, angle_dims) angle expansion not implemented
    # (it is the identity for the default angle_dims=[]).
    if normalize:
        x = regressor_normalize(x, mx, iSx)
    # TODO(synk): self.model is an arbitrary user-supplied nn.Module with no fixed
    # Pallas equivalent; it is accepted here as an optional callable.
    outs = model_fn(x) if model_fn is not None else x
    if callable(output_density):
        # TODO(synk): output_density is an arbitrary user-supplied callable.
        scaling_params = (my, Sy) if normalize else None
        outs = output_density(outs, scaling_params=scaling_params)
    return outs


if __name__ == "__main__":
    key = jax.random.PRNGKey(0)
    k_data, k_x = jax.random.split(key)

    batch, d = 16, 32
    # Dataset statistics as Regressor.set_dataset() would compute them
    # (torch.std is the unbiased estimator -> ddof=1).
    X = jax.random.normal(k_data, (64, d), dtype=jnp.float32) * 2.0 + 1.0
    mx = X.mean(axis=0)
    Sx = X.std(axis=0, ddof=1)
    iSx = 1.0 / Sx

    x = jax.random.normal(k_x, (batch, d), dtype=jnp.float32)

    out = regressor_forward(x, mx, iSx, normalize=True)
    out = jax.block_until_ready(out)

    ref = (x - mx) * iSx
    assert out.shape == x.shape and out.dtype == x.dtype
    assert jnp.allclose(out, ref, atol=1e-5, rtol=1e-5), \
        float(jnp.max(jnp.abs(out - ref)))
    print("KERNEL_OK")
</pallas_src>

<mosaic_0001>
module attributes {stable_mosaic.version = 11 : i64} {
  func.func @_normalize_kernel(%arg0: i32, %arg1: memref<16x32xf32, #tpu.memory_space<vmem>>, %arg2: memref<1x32xf32, #tpu.memory_space<vmem>>, %arg3: memref<1x32xf32, #tpu.memory_space<vmem>>, %arg4: memref<16x32xf32, #tpu.memory_space<vmem>>) attributes {dimension_semantics = [#tpu.dimension_semantics<parallel>], iteration_bounds = array<i64: 1>, scalar_prefetch = 0 : i64, scratch_operands = 0 : i64, tpu.core_type = #tpu.core_type<tc>, window_params = [{transform_indices = @transform_0, window_bounds = array<i64: 16, 32>}, {pipeline_mode = #tpu.pipeline_mode<synchronous>, transform_indices = @transform_1, window_bounds = array<i64: 1, 32>}, {pipeline_mode = #tpu.pipeline_mode<synchronous>, transform_indices = @transform_2, window_bounds = array<i64: 1, 32>}, {transform_indices = @transform_3, window_bounds = array<i64: 16, 32>}]} {
    %c0 = arith.constant 0 : index
    %c0_0 = arith.constant 0 : index
    %0 = vector.load %arg1[%c0, %c0_0] : memref<16x32xf32, #tpu.memory_space<vmem>>, vector<16x32xf32>
    %c0_1 = arith.constant 0 : index
    %c0_2 = arith.constant 0 : index
    %1 = vector.load %arg2[%c0_1, %c0_2] : memref<1x32xf32, #tpu.memory_space<vmem>>, vector<1x32xf32>
    %2 = vector.broadcast %1 : vector<1x32xf32> to vector<16x32xf32>
    %3 = arith.subf %0, %2 : vector<16x32xf32>
    %c0_3 = arith.constant 0 : index
    %c0_4 = arith.constant 0 : index
    %4 = vector.load %arg3[%c0_3, %c0_4] : memref<1x32xf32, #tpu.memory_space<vmem>>, vector<1x32xf32>
    %5 = vector.broadcast %4 : vector<1x32xf32> to vector<16x32xf32>
    %6 = arith.mulf %3, %5 : vector<16x32xf32>
    %c0_5 = arith.constant 0 : index
    %c0_6 = arith.constant 0 : index
    %7 = vector.load %arg4[%c0_5, %c0_6] : memref<16x32xf32, #tpu.memory_space<vmem>>, vector<16x32xf32>
    tpu.vector_store %arg4[%c0_5, %c0_6], %6 {strides = array<i32>} : memref<16x32xf32, #tpu.memory_space<vmem>>, vector<16x32xf32>,
    return
  }
  func.func @transform_0(%arg0: i32) -> (i32, i32) {
    %c0_i32 = arith.constant 0 : i32
    %c0_i32_0 = arith.constant 0 : i32
    return %arg0, %c0_i32 : i32, i32
  }
  func.func @transform_1(%arg0: i32) -> (i32, i32) {
    %c0_i32 = arith.constant 0 : i32
    %c0_i32_0 = arith.constant 0 : i32
    %c0_i32_1 = arith.constant 0 : i32
    return %c0_i32, %c0_i32_0 : i32, i32
  }
  func.func @transform_2(%arg0: i32) -> (i32, i32) {
    %c0_i32 = arith.constant 0 : i32
    %c0_i32_0 = arith.constant 0 : i32
    %c0_i32_1 = arith.constant 0 : i32
    return %c0_i32, %c0_i32_0 : i32, i32
  }
  func.func @transform_3(%arg0: i32) -> (i32, i32) {
    %c0_i32 = arith.constant 0 : i32
    %c0_i32_0 = arith.constant 0 : i32
    return %arg0, %c0_i32 : i32, i32
  }
}

</mosaic_0001>

<bundles_post_ra>
// kernel: tpu_custom_call.1
= control target key start
LH: loop header
LB: loop body
LE: loop exit
PB: predicated region body
PF: predicated region fallthrough
CT: control target
= control target key end

     0   :  { %8 = vsyncpa [#allocation3], 0  ;;  %s183_s0 = inlined_call_operand.hbm [shape: f32[16,32], index: 0, kind: input, shape index: {}]   ;;  %s184_s1 = inlined_call_operand.vmem [shape: f32[1,32], index: 1, kind: input, shape index: {}]   ;;  %s185_s2 = inlined_call_operand.vmem [shape: f32[1,32], index: 2, kind: input, shape index: {}]   ;;  %s186_s3 = inlined_call_operand.hbm [shape: f32[16,32], index: 3, kind: output, shape index: {}]  }
   0x1   :  { %9 = vsyncpa [#allocation4], 0  ;;  %s123_s12 = smov [#allocation2]   ;;  %s75_s16 = scalar_lea.hbm %s183_s0, 256 }
   0x2   :  { %s15_s13 = sshll.u32 %s123_s12, 4  ;;  %p76_p0 = scmp.ne.s32.totalorder %s183_s0, %s75_s16  ;;  %s16_s13 = int_to_ptr.vmem [resolvable:$true] %s15_s13 }
   0x3   :  { %p79_p1 = scmp.lt.u32.totalorder %s75_s16, %s183_s0 }
   0x5   :  { %p81_p2 = pnand %p79_p1, %p76_p0 }
   0x7   :  { %84 = shalt.err (!%p81_p2)
}
   0x8   :  { %s85_s21 = scalar_lea.vmem %s16_s13, 256  ;;  %p90_p4 = scmp.lt.s32.totalorder %s16_s13, %s16_s13 }
   0x9   :  { %p86_p3 = scmp.ne.s32.totalorder %s16_s13, %s85_s21  ;;  %p91_p5 = scmp.lt.s32.totalorder %s85_s21, %s85_s21 }
   0xb   :  { %p92_p6 = por %p91_p5, %p90_p4 }
   0xd   :  { %p93_p7 = pnand %p92_p6, %p86_p3 }
   0xf   :  { %96 = shalt.err (!%p93_p7)
}
  0x10   :  { %s124_s22 = smov 128   ;;  %s125_s23 = smov 8  }
  0x11   :  { %21 = dma.hbm_to_vmem [thread:$0]  %s183_s0, 256, %s16_s13, [#allocation3], %s124_s22, %s124_s22, %s125_s23  }
  0x12   :  { %119 = dma.done.wait [#allocation3], 256  }
  0x13   :  { %120 = vsyncadd [#allocation3], 4294967040  ;;  %v29_v0 = vld [vmem:[#allocation2] sm:$0xff]  ;;  %v30_v4 = vld [vmem:[#allocation2 + $0x8] sm:$0xff]  ;;  %s126_s30 = smov [#allocation5]   ;;  %vm49_vm0 = vcmask 261120  }
  0x14   :  { %v69_v1 = vld [vmem:[%s184_s1] ss:$0 sm:$0xff]  ;;  %s57_s4 = sshll.u32 %s126_s30, 4  ;;  %s58_s4 = int_to_ptr.vmem [resolvable:$true] %s57_s4 }
  0x15   :  { %v70_v2 = vld [vmem:[%s185_s2] ss:$0 sm:$0xff]  ;;  %v38_v3 = vsub.f32 %v29_v0, %v69_v1  ;;  %v39_v5 = vsub.f32 %v30_v4, %v69_v1  ;;  %s97_s0 = scalar_lea.vmem %s58_s4, 256  ;;  %p102_p9 = scmp.lt.s32.totalorder %s58_s4, %s58_s4 }
  0x16   :  { %p98_p8 = scmp.ne.s32.totalorder %s58_s4, %s97_s0  ;;  %p103_p10 = scmp.lt.s32.totalorder %s97_s0, %s97_s0 }
  0x17   :  { %v47_v6 = vmul.f32 %v70_v2, %v38_v3  ;;  %v48_v7 = vmul.f32 %v70_v2, %v39_v5 }
  0x18   :  { %p104_p11 = por %p103_p10, %p102_p9 }
  0x19   :  { %50 = vst.msk [vmem:[#allocation5] sm:$0xff] %vm49_vm0, %v47_v6  ;;  %51 = vst.msk [vmem:[#allocation5 + $0x8] sm:$0xff] %vm49_vm0, %v48_v7 }
  0x1a   :  { %p105_p12 = pnand %p104_p11, %p98_p8 }
  0x1c   :  { %108 = shalt.err (!%p105_p12)
}
  0x1d   :  { %s109_s5 = scalar_lea.hbm %s186_s3, 256 }
  0x1e   :  { %p110_p13 = scmp.ne.s32.totalorder %s186_s3, %s109_s5  ;;  %p113_p0 = scmp.lt.u32.totalorder %s109_s5, %s186_s3 }
  0x20   :  { %p115_p1 = pnand %p113_p0, %p110_p13 }
  0x22   :  { %118 = shalt.err (!%p115_p1)
}
  0x23   :  { %63 = dma.vmem_to_hbm [thread:$0]  %s58_s4, 256, %s186_s3, [#allocation4], %s124_s22, %s124_s22, %s125_s23  }
  0x24   :  { %121 = dma.done.wait [#allocation4], 256  }
  0x25   :  { %122 = vsyncadd [#allocation4], 4294967040 }
  0x26   :  { %67 = vsyncpa [#allocation3], 1 }
  0x27   :  { %68 = vsyncpa [#allocation4], 1 }

</bundles_post_ra>
